<compile_context>
chip_gen: v7x
topology: tpu7x:2x2x1
jax: 0.10.0
libtpu: 0.0.40
codegen_flags: <defaults>
</compile_context>

<pallas_src>
import jax
import jax.numpy as jnp
from jax.experimental import pallas as pl
from jax.experimental.pallas import tpu as pltpu


def _round_up(x: int, m: int) -> int:
    return (x + m - 1) // m * m


def _patch_embed_kernel(p_ref, w_ref, b_ref, o_ref):
    # p_ref: (TILE, Kp)  bf16 patch rows for this grid step
    # w_ref: (Kp, Ep)    bf16 projection weight (constant index_map -> resident)
    # b_ref: (1, Ep)     f32 bias
    # o_ref: (TILE, Ep)  output tile
    acc = jnp.dot(p_ref[...], w_ref[...], preferred_element_type=jnp.float32)
    o_ref[...] = (acc + b_ref[...]).astype(o_ref.dtype)


def patch_embed_3d(x, weight, bias, patch_size, *, tile_rows=1024):
    """x: (B, C, D, H, W).  weight: (E, C, p, p, p).  bias: (E,).  -> (B, N, E)."""
    B, C, D, H, W = x.shape
    E = weight.shape[0]
    p = patch_size
    assert D % p == 0 and H % p == 0 and W % p == 0
    Dp, Hp, Wp = D // p, H // p, W // p
    N = Dp * Hp * Wp
    K = C * p * p * p
    out_dtype = x.dtype

    # ---- glue: patchify (matches Conv3d stride==kernel semantics) ----------
    # bf16 cast before the transpose: XLA fuses the convert into the patchify
    # fusion, so the (B*N, K) slab written to HBM is bf16 (half the traffic),
    # and the kernel streams bf16 into the MXU (bf16-native on v5e/v6e/v7x).
    # TODO(synk): eliminate the materialized patch slab entirely (input fusion
    # or in-kernel patchify) — it is the remaining extra HBM round trip.
    xb = x.astype(jnp.bfloat16)
    patches = xb.reshape(B, C, Dp, p, Hp, p, Wp, p)
    patches = patches.transpose(0, 2, 4, 6, 1, 3, 5, 7)   # (B,Dp,Hp,Wp,C,p,p,p)
    patches = patches.reshape(B * N, K)                    # fold batch into rows

    # ---- TPU-friendly padding ----------------------------------------------
    rows = B * N
    tile = min(tile_rows, _round_up(rows, 8))   # rows per grid step (mult of 8)
    rows_pad = _round_up(rows, tile)            # last tile fully covered
    Kp = _round_up(K, 8)     # unmasked sublane loads; do NOT pad K to 128
    Ep = _round_up(E, 128)   # lane-dense output -> unmasked vst

    if rows_pad != rows or Kp != K:
        patches = jnp.pad(patches, ((0, rows_pad - rows), (0, Kp - K)))

    # (E, C, p, p, p) -> (K, E); (c, kd, kh, kw) order matches the patchify.
    w_flat = weight.reshape(E, K).T.astype(jnp.bfloat16)
    if Kp != K or Ep != E:
        w_flat = jnp.pad(w_flat, ((0, Kp - K), (0, Ep - E)))
    b_row = bias.astype(jnp.float32)
    if Ep != E:
        b_row = jnp.pad(b_row, (0, Ep - E))
    b_row = b_row.reshape(1, Ep)

    # ---- scoped-VMEM budget: 2x patch tile + 2x out tile + weight + bias ---
    needed = (2 * tile * Kp * 2      # bf16 patch tiles (double-buffered)
              + 2 * Kp * Ep * 2      # bf16 weight buffers
              + 2 * Ep * 4           # f32 bias buffers
              + 2 * tile * Ep * 4)   # f32 output tiles (double-buffered)
    vmem_limit = int(min(max(needed * 3 // 2 + (4 << 20), 32 << 20), 48 << 20))

    out = pl.pallas_call(
        _patch_embed_kernel,
        out_shape=jax.ShapeDtypeStruct((rows_pad, Ep), out_dtype),
        grid=(rows_pad // tile,),
        in_specs=[
            pl.BlockSpec((tile, Kp), lambda i: (i, 0)),
            pl.BlockSpec((Kp, Ep), lambda i: (0, 0)),
            pl.BlockSpec((1, Ep), lambda i: (0, 0)),
        ],
        out_specs=pl.BlockSpec((tile, Ep), lambda i: (i, 0)),
        compiler_params=pltpu.CompilerParams(
            dimension_semantics=("parallel",),
            vmem_limit_bytes=vmem_limit,
        ),
    )(patches, w_flat, b_row)

    return out[:rows, :E].reshape(B, N, E)


def patch_embed_3d_ref(x, weight, bias, patch_size):
    """Pure-JAX f32 reference using conv_general_dilated (== PyTorch Conv3d)."""
    y = jax.lax.conv_general_dilated(
        x, weight,
        window_strides=(patch_size,) * 3,
        padding="VALID",
        dimension_numbers=("NCDHW", "OIDHW", "NCDHW"),
    )
    y = y + bias.reshape(1, -1, 1, 1, 1)
    B, E = y.shape[0], y.shape[1]
    # 'b c d h w -> b (d h w) c'
    return y.transpose(0, 2, 3, 4, 1).reshape(B, -1, E)


if __name__ == "__main__":
    key = jax.random.PRNGKey(0)
    kx, kw, kb = jax.random.split(key, 3)

    # Small shapes consistent with the module defaults (in_channels=1, patch=4).
    B, C, D, H, W = 2, 1, 16, 16, 16
    patch_size = 4
    embed_dim = 32

    x = jax.random.normal(kx, (B, C, D, H, W), dtype=jnp.float32)
    weight = (jax.random.normal(
        kw, (embed_dim, C, patch_size, patch_size, patch_size),
        dtype=jnp.float32) * 0.02)
    bias = jax.random.normal(kb, (embed_dim,), dtype=jnp.float32) * 0.01

    out = patch_embed_3d(x, weight, bias, patch_size)
    out = jax.block_until_ready(out)

    ref = patch_embed_3d_ref(x, weight, bias, patch_size)
    N = (D // patch_size) * (H // patch_size) * (W // patch_size)
    assert out.shape == (B, N, embed_dim), out.shape
    # bf16 operands (f32 accumulation) -> loosened tolerance vs the f32 ref.
    assert jnp.allclose(out, ref, atol=2e-2, rtol=2e-2), \
        float(jnp.max(jnp.abs(out - ref)))

    print("KERNEL_OK")
</pallas_src>

<mosaic_0001>
module attributes {stable_mosaic.version = 11 : i64} {
  func.func @_patch_embed_kernel(%arg0: i32, %arg1: memref<128x64xbf16, #tpu.memory_space<vmem>>, %arg2: memref<64x128xbf16, #tpu.memory_space<vmem>>, %arg3: memref<1x128xf32, #tpu.memory_space<vmem>>, %arg4: memref<128x128xf32, #tpu.memory_space<vmem>>) attributes {dimension_semantics = [#tpu.dimension_semantics<parallel>], iteration_bounds = array<i64: 1>, scalar_prefetch = 0 : i64, scratch_operands = 0 : i64, tpu.core_type = #tpu.core_type<tc>, window_params = [{transform_indices = @transform_0, window_bounds = array<i64: 128, 64>}, {pipeline_mode = #tpu.pipeline_mode<synchronous>, transform_indices = @transform_1, window_bounds = array<i64: 64, 128>}, {pipeline_mode = #tpu.pipeline_mode<synchronous>, transform_indices = @transform_2, window_bounds = array<i64: 1, 128>}, {transform_indices = @transform_3, window_bounds = array<i64: 128, 128>}]} {
    %c0 = arith.constant 0 : index
    %c0_0 = arith.constant 0 : index
    %0 = vector.load %arg1[%c0, %c0_0] : memref<128x64xbf16, #tpu.memory_space<vmem>>, vector<128x64xbf16>
    %c0_1 = arith.constant 0 : index
    %c0_2 = arith.constant 0 : index
    %1 = vector.load %arg2[%c0_1, %c0_2] : memref<64x128xbf16, #tpu.memory_space<vmem>>, vector<64x128xbf16>
    %cst = arith.constant dense<0.000000e+00> : vector<128x128xf32>
    %2 = tpu.matmul %0, %1, %cst {dimension_numbers = #tpu.dot_dimension_numbers<[1], [0], [0], [1], [0, 0, 1, 1], [], []>} : vector<128x64xbf16>, vector<64x128xbf16>, vector<128x128xf32> -> vector<128x128xf32>
    %c0_3 = arith.constant 0 : index
    %c0_4 = arith.constant 0 : index
    %3 = vector.load %arg3[%c0_3, %c0_4] : memref<1x128xf32, #tpu.memory_space<vmem>>, vector<1x128xf32>
    %4 = vector.broadcast %3 : vector<1x128xf32> to vector<128x128xf32>
    %5 = arith.addf %2, %4 : vector<128x128xf32>
    %c0_5 = arith.constant 0 : index
    %c0_6 = arith.constant 0 : index
    %6 = vector.load %arg4[%c0_5, %c0_6] : memref<128x128xf32, #tpu.memory_space<vmem>>, vector<128x128xf32>
    tpu.vector_store %arg4[%c0_5, %c0_6], %5 {strides = array<i32>} : memref<128x128xf32, #tpu.memory_space<vmem>>, vector<128x128xf32>,
    return
  }
  func.func @transform_0(%arg0: i32) -> (i32, i32) {
    %c0_i32 = arith.constant 0 : i32
    %c0_i32_0 = arith.constant 0 : i32
    return %arg0, %c0_i32 : i32, i32
  }
  func.func @transform_1(%arg0: i32) -> (i32, i32) {
    %c0_i32 = arith.constant 0 : i32
    %c0_i32_0 = arith.constant 0 : i32
    %c0_i32_1 = arith.constant 0 : i32
    return %c0_i32, %c0_i32_0 : i32, i32
  }
  func.func @transform_2(%arg0: i32) -> (i32, i32) {
    %c0_i32 = arith.constant 0 : i32
    %c0_i32_0 = arith.constant 0 : i32
    %c0_i32_1 = arith.constant 0 : i32
    return %c0_i32, %c0_i32_0 : i32, i32
  }
  func.func @transform_3(%arg0: i32) -> (i32, i32) {
    %c0_i32 = arith.constant 0 : i32
    %c0_i32_0 = arith.constant 0 : i32
    return %arg0, %c0_i32 : i32, i32
  }
}

</mosaic_0001>

<bundles_post_ra>
// kernel: tpu_custom_call.1
= control target key start
LH: loop header
LB: loop body
LE: loop exit
PB: predicated region body
PF: predicated region fallthrough
CT: control target
= control target key end

     0   :  { %vm111_vm0 = vcmask 523264   ;;  %s451_s0 = inlined_call_operand.vmem [shape: bf16[128,64], index: 0, kind: input, shape index: {}]   ;;  %s452_s1 = inlined_call_operand.vmem [shape: bf16[64,128], index: 1, kind: input, shape index: {}]   ;;  %s453_s2 = inlined_call_operand.vmem [shape: f32[1,128], index: 2, kind: input, shape index: {}]   ;;  %s454_s3 = inlined_call_operand.hbm [shape: f32[128,128], index: 3, kind: output, shape index: {}]  }
   0x1   :  { %v333_v0 = vld [vmem:[%s452_s1] sm:$0xff]   ;;  %v334_v1 = vld [vmem:[%s452_s1 + $0x8] sm:$0xff]   ;;  %v335_v2 = vld [vmem:[%s452_s1 + $0x10] sm:$0xff]  }
   0x2   :  { %298 = vmatprep.subr.bf16.mxu0 %v333_v0  ;;  %322 = vmatprep.subr.bf16.mxu1 %v333_v0  ;;  %v337_v3 = vld [vmem:[%s451_s0] sm:$0xff]   ;;  %v336_v5 = vld [vmem:[%s452_s1 + $0x18] sm:$0xff]  }
   0x3   :  { %299 = vmatpush3.bf16.msra.mxu0 %v333_v0  ;;  %326 = vmatpush3.bf16.msra.mxu1 %v333_v0  ;;  %v338_v4 = vld [vmem:[%s451_s0 + $0x20] sm:$0xff]  }
   0x4   :  { %300 = vmatprep.subr.bf16.mxu0 %v334_v1  ;;  %323 = vmatprep.subr.bf16.mxu1 %v334_v1 }
   0x5   :  { %306 = vmatprep.mubr.msk.bf16.mxu0 %vm111_vm0, %v337_v3  ;;  %314 = vmatprep.mubr.msk.bf16.mxu1 %vm111_vm0, %v338_v4 }
   0x7   :  { %301 = vmatpush3.bf16.msra.mxu0 %v334_v1  ;;  %327 = vmatpush3.bf16.msra.mxu1 %v334_v1 }
   0x8   :  { %302 = vmatprep.subr.bf16.mxu0 %v335_v2  ;;  %324 = vmatprep.subr.bf16.mxu1 %v335_v2 }
   0xb   :  { %303 = vmatpush3.bf16.msra.mxu0 %v335_v2  ;;  %328 = vmatpush3.bf16.msra.mxu1 %v335_v2 }
   0xc   :  { %304 = vmatprep.subr.bf16.mxu0 %v336_v5  ;;  %325 = vmatprep.subr.bf16.mxu1 %v336_v5 }
   0xd   :  { %8 = vsyncpa [#allocation3], 0  ;;  %v339_v6 = vld [vmem:[%s451_s0 + $0x8] sm:$0xff]   ;;  %v341_v8 = vld [vmem:[%s451_s0 + $0x10] sm:$0xff]  }
   0xe   :  { %v340_v7 = vld [vmem:[%s451_s0 + $0x28] sm:$0xff]   ;;  %v342_v9 = vld [vmem:[%s451_s0 + $0x30] sm:$0xff]   ;;  %v343_v10 = vld [vmem:[%s451_s0 + $0x18] sm:$0xff]  }
   0xf   :  { %305 = vmatpush3.bf16.msra.mxu0 %v336_v5  ;;  %329 = vmatpush3.bf16.msra.mxu1 %v336_v5  ;;  %v344_v11 = vld [vmem:[%s451_s0 + $0x38] sm:$0xff]   ;;  %v265_v12 = vld [vmem:[%s453_s2] ss:$0 sm:$0xff]  ;;  %s369_s0 = smov [#allocation2]  }
  0x10   :  { %s254_s2 = sshll.u32 %s369_s0, 4  ;;  %s255_s2 = int_to_ptr.vmem [resolvable:$true] %s254_s2 }
  0x11   :  { %s345_s10 = scalar_lea.vmem %s255_s2, 2048  ;;  %p350_p1 = scmp.lt.s32.totalorder %s255_s2, %s255_s2 }
  0x12   :  { %307 = vmatmul.mubr.msk.bf16.vlgmr.msra.gmra.mrb[0].mxu0 %vm111_vm0, %v339_v6  ;;  %315 = vmatmul.mubr.msk.bf16.vlgmr.msra.gmra.mrb[0].mxu1 %vm111_vm0, %v340_v7  ;;  %p346_p0 = scmp.ne.s32.totalorder %s255_s2, %s345_s10  ;;  %p351_p2 = scmp.lt.s32.totalorder %s345_s10, %s345_s10 }
  0x13   :  { %310 = vmatprep.mubr.msk.bf16.mxu0 %vm111_vm0, %v341_v8  ;;  %318 = vmatprep.mubr.msk.bf16.mxu1 %vm111_vm0, %v342_v9 }
  0x14   :  { %p352_p3 = por %p351_p2, %p350_p1 }
  0x16   :  { %p353_p4 = pnand %p352_p3, %p346_p0 }
  0x1a   :  { %311 = vmatmul.mubr.msk.bf16.gmra.mrb[4].mxu0 %vm111_vm0, %v343_v10  ;;  %319 = vmatmul.mubr.msk.bf16.gmra.mrb[4].mxu1 %vm111_vm0, %v344_v11 }
  0xe5   :  { %v308_v13 = vpop.f32.mrb[0].mxu0  ;;  %v316_v14 = vpop.f32.mrb[0].mxu1 }
  0xe6   :  { %v179_v15 = vadd.f32 %v308_v13, %v265_v12  ;;  %v211_v16 = vadd.f32 %v316_v14, %v265_v12  ;;  %v170_v17 = vpop.f32.mrb[1].mxu0  ;;  %v202_v18 = vpop.f32.mrb[1].mxu1 }
  0xe7   :  { %v171_v19 = vadd.f32 %v265_v12, %v170_v17  ;;  %v203_v20 = vadd.f32 %v265_v12, %v202_v18  ;;  %v309_v21 = vpop.f32.mrb[2].mxu0  ;;  %v317_v22 = vpop.f32.mrb[2].mxu1 }
  0xe8   :  { %235 = vst [vmem:[#allocation2 + $0x10] sm:$0xff] %v179_v15  ;;  %243 = vst [vmem:[#allocation2 + $0x50] sm:$0xff] %v211_v16  ;;  %v182_v23 = vadd.f32 %v309_v21, %v265_v12  ;;  %v214_v24 = vadd.f32 %v317_v22, %v265_v12  ;;  %v173_v25 = vpop.f32.mrb[3].mxu0  ;;  %v205_v26 = vpop.f32.mrb[3].mxu1 }
  0xe9   :  { %233 = vst [vmem:[#allocation2] sm:$0xff] %v171_v19  ;;  %241 = vst [vmem:[#allocation2 + $0x40] sm:$0xff] %v203_v20  ;;  %v174_v27 = vadd.f32 %v265_v12, %v173_v25  ;;  %v206_v28 = vadd.f32 %v265_v12, %v205_v26 }
  0xea   :  { %236 = vst [vmem:[#allocation2 + $0x18] sm:$0xff] %v182_v23  ;;  %244 = vst [vmem:[#allocation2 + $0x58] sm:$0xff] %v214_v24 }
  0xeb   :  { %234 = vst [vmem:[#allocation2 + $0x8] sm:$0xff] %v174_v27  ;;  %242 = vst [vmem:[#allocation2 + $0x48] sm:$0xff] %v206_v28 }
  0xed   :  { %v312_v29 = vpop.f32.mrb[4].mxu0  ;;  %v320_v30 = vpop.f32.mrb[4].mxu1 }
  0xee   :  { %v195_v31 = vadd.f32 %v312_v29, %v265_v12  ;;  %v227_v32 = vadd.f32 %v320_v30, %v265_v12  ;;  %v186_v33 = vpop.f32.mrb[5].mxu0  ;;  %v218_v34 = vpop.f32.mrb[5].mxu1 }
  0xef   :  { %v187_v35 = vadd.f32 %v265_v12, %v186_v33  ;;  %v219_v36 = vadd.f32 %v265_v12, %v218_v34  ;;  %v313_v37 = vpop.f32.mrb[6].mxu0  ;;  %v321_v38 = vpop.f32.mrb[6].mxu1 }
  0xf0   :  { %239 = vst [vmem:[#allocation2 + $0x30] sm:$0xff] %v195_v31  ;;  %247 = vst [vmem:[#allocation2 + $0x70] sm:$0xff] %v227_v32  ;;  %v198_v39 = vadd.f32 %v313_v37, %v265_v12  ;;  %v230_v40 = vadd.f32 %v321_v38, %v265_v12  ;;  %v189_v41 = vpop.f32.mrb[7].mxu0  ;;  %v221_v42 = vpop.f32.mrb[7].mxu1 }
  0xf1   :  { %237 = vst [vmem:[#allocation2 + $0x20] sm:$0xff] %v187_v35  ;;  %245 = vst [vmem:[#allocation2 + $0x60] sm:$0xff] %v219_v36  ;;  %v190_v43 = vadd.f32 %v265_v12, %v189_v41  ;;  %v222_v44 = vadd.f32 %v265_v12, %v221_v42 }
  0xf2   :  { %240 = vst [vmem:[#allocation2 + $0x38] sm:$0xff] %v198_v39  ;;  %248 = vst [vmem:[#allocation2 + $0x78] sm:$0xff] %v230_v40 }
  0xf3   :  { %238 = vst [vmem:[#allocation2 + $0x28] sm:$0xff] %v190_v43  ;;  %246 = vst [vmem:[#allocation2 + $0x68] sm:$0xff] %v222_v44 }
  0xf4   :  { %356 = shalt.err (!%p353_p4)
}
  0xf5   :  { %s357_s13 = scalar_lea.hbm %s454_s3, 2048 }
  0xf6   :  { %p358_p5 = scmp.ne.s32.totalorder %s454_s3, %s357_s13  ;;  %p361_p6 = scmp.lt.u32.totalorder %s357_s13, %s454_s3 }
  0xf8   :  { %p363_p7 = pnand %p361_p6, %p358_p5 }
  0xfa   :  { %366 = shalt.err (!%p363_p7)
}
  0xfb   :  { %s370_s18 = smov 128   ;;  %s371_s19 = smov 8  }
  0xfc   :  { %260 = dma.vmem_to_hbm [thread:$0]  %s255_s2, 2048, %s454_s3, [#allocation3], %s370_s18, %s370_s18, %s371_s19  }
  0xfd   :  { %367 = dma.done.wait [#allocation3], 2048  }
  0xfe   :  { %368 = vsyncadd [#allocation3], 4294965248 }
  0xff   :  { %264 = vsyncpa [#allocation3], 1 }

</bundles_post_ra>
